<compile_context>
chip_gen: v6e
topology: v6e:2x2x1
jax: 0.10.0
libtpu: 0.0.40
codegen_flags: <defaults>
</compile_context>

<pallas_src>
import jax
import jax.numpy as jnp
from jax import lax
from jax.experimental import pallas as pl
from jax.experimental.pallas import tpu as pltpu

HIDDEN = 768
NUM_CLASSES = 2


def head_kernel(x_ref, w_ref, o_ref):
    # Dropout(p=0.25): identity under eval/inference semantics.
    # TODO(synk): training-mode dropout would need pltpu.prng_seed +
    # pltpu.prng_random_bits masking; not implemented here.
    x = x_ref[...]                                   # (tb, H) CLS rows
    w = w_ref[...]                                   # (C, H)  PyTorch Linear layout
    # (C, tb) = w @ x.T: both operands contract on their last (lane-major) dim,
    # MXU-natural, and the result is lane-dense along the batch dimension so the
    # store + writeback are unmasked/contiguous.
    y_t = lax.dot_general(
        w, x,
        dimension_numbers=(((1,), (1,)), ((), ())),
        preferred_element_type=jnp.float32)
    o_ref[...] = y_t                                 # f32 accumulator out


def classification_head(features, weight, bias, *, batch_tile=1024):
    """features: [B, S, H]; weight: [C, H] (PyTorch Linear layout); bias: [C]."""
    B, S, H = features.shape
    C = weight.shape[0]

    # Free reshape: [B, S, H] -> [B, S*H].  Column block [0:H] of each row is
    # exactly the CLS token, so the kernel's BlockSpec pipeline DMAs only the
    # B*H CLS elements from HBM (strided rectangular tile), nothing else.
    flat = features.reshape(B, S * H)

    # Tile the batch.  Either tb == B (full dim: always legal), or tb is a
    # multiple of 128 (legal as the out block's lane dim and as the input
    # block's sublane dim).
    if B <= batch_tile:
        tb = B
    else:
        tb = min(B, max(128, (batch_tile // 128) * 128))
    grid = (pl.cdiv(B, tb),)

    logits_t = pl.pallas_call(
        head_kernel,
        out_shape=jax.ShapeDtypeStruct((C, B), jnp.float32),
        grid=grid,
        in_specs=[
            # CLS rows, batch-tiled; column block 0 of the flattened features.
            pl.BlockSpec((tb, H), lambda i: (i, 0)),
            # Weight resident across the grid, lane-dense [2, 768].
            pl.BlockSpec((C, H), lambda i: (0, 0)),
        ],
        # Transposed, lane-dense output tile.
        out_specs=pl.BlockSpec((C, tb), lambda i: (0, i)),
        compiler_params=pltpu.CompilerParams(
            dimension_semantics=("parallel",)),       # megacore-shard batch (v7x)
    )(flat, weight)

    # Tiny (C, B) epilogue: transpose back, add bias, cast; fuses into one
    # elementwise XLA op over 2*B elements.
    return (logits_t.T + bias[None, :]).astype(features.dtype)


if __name__ == "__main__":
    key = jax.random.PRNGKey(0)
    k_feat, k_w, k_b = jax.random.split(key, 3)

    B, S = 2, 8
    features = jax.random.normal(k_feat, (B, S, HIDDEN), dtype=jnp.float32)

    # Deterministic init matching torch.nn.Linear(768, 2):
    # U(-1/sqrt(fan_in), 1/sqrt(fan_in)) for both weight and bias.
    bound = 1.0 / (HIDDEN ** 0.5)
    weight = jax.random.uniform(k_w, (NUM_CLASSES, HIDDEN), jnp.float32, -bound, bound)
    bias = jax.random.uniform(k_b, (NUM_CLASSES,), jnp.float32, -bound, bound)

    out = jax.jit(classification_head)(features, weight, bias)
    out = jax.block_until_ready(out)

    # Reference check in plain JAX (eval-mode dropout == identity).
    ref = features[:, 0, :] @ weight.T + bias
    assert out.shape == (B, NUM_CLASSES)
    assert jnp.allclose(out, ref, atol=1e-4, rtol=1e-4)

    print("KERNEL_OK")
</pallas_src>

<mosaic_0001>
module attributes {stable_mosaic.version = 11 : i64} {
  func.func @head_kernel(%arg0: i32, %arg1: memref<2x768xf32, #tpu.memory_space<vmem>>, %arg2: memref<2x768xf32, #tpu.memory_space<vmem>>, %arg3: memref<2x2xf32, #tpu.memory_space<vmem>>) attributes {dimension_semantics = [#tpu.dimension_semantics<parallel>], iteration_bounds = array<i64: 1>, scalar_prefetch = 0 : i64, scratch_operands = 0 : i64, tpu.core_type = #tpu.core_type<tc>, window_params = [{transform_indices = @transform_0, window_bounds = array<i64: 2, 768>}, {pipeline_mode = #tpu.pipeline_mode<synchronous>, transform_indices = @transform_1, window_bounds = array<i64: 2, 768>}, {transform_indices = @transform_2, window_bounds = array<i64: 2, 2>}]} {
    %c0 = arith.constant 0 : index
    %c0_0 = arith.constant 0 : index
    %0 = vector.load %arg1[%c0, %c0_0] : memref<2x768xf32, #tpu.memory_space<vmem>>, vector<2x768xf32>
    %c0_1 = arith.constant 0 : index
    %c0_2 = arith.constant 0 : index
    %1 = vector.load %arg2[%c0_1, %c0_2] : memref<2x768xf32, #tpu.memory_space<vmem>>, vector<2x768xf32>
    %cst = arith.constant dense<0.000000e+00> : vector<2x2xf32>
    %2 = tpu.matmul %1, %0, %cst {dimension_numbers = #tpu.dot_dimension_numbers<[1], [1], [0], [0], [0, 0, 1, 0], [], []>} : vector<2x768xf32>, vector<2x768xf32>, vector<2x2xf32> -> vector<2x2xf32>
    %c0_3 = arith.constant 0 : index
    %c0_4 = arith.constant 0 : index
    %3 = vector.load %arg3[%c0_3, %c0_4] : memref<2x2xf32, #tpu.memory_space<vmem>>, vector<2x2xf32>
    tpu.vector_store %arg3[%c0_3, %c0_4], %2 {strides = array<i32>} : memref<2x2xf32, #tpu.memory_space<vmem>>, vector<2x2xf32>,
    return
  }
  func.func @transform_0(%arg0: i32) -> (i32, i32) {
    %c0_i32 = arith.constant 0 : i32
    %c0_i32_0 = arith.constant 0 : i32
    return %arg0, %c0_i32 : i32, i32
  }
  func.func @transform_1(%arg0: i32) -> (i32, i32) {
    %c0_i32 = arith.constant 0 : i32
    %c0_i32_0 = arith.constant 0 : i32
    %c0_i32_1 = arith.constant 0 : i32
    return %c0_i32, %c0_i32_0 : i32, i32
  }
  func.func @transform_2(%arg0: i32) -> (i32, i32) {
    %c0_i32 = arith.constant 0 : i32
    %c0_i32_0 = arith.constant 0 : i32
    return %c0_i32, %arg0 : i32, i32
  }
}

</mosaic_0001>

<bundles_post_ra>
// kernel: classification_head.1
= control target key start
LH: loop header
LB: loop body
LE: loop exit
PB: predicated region body
PF: predicated region fallthrough
CT: control target
= control target key end

     0   :  { %v21_v0 = vlaneseq  ;;  %v302_v2 = vmov 1983009808   ;;  %vm291_vm0 = vcmask 9216   ;;  %s333_s0 = inlined_call_operand.vmem [shape: f32[2,6144], index: 0, kind: input, shape index: {}]   ;;  %s334_s1 = inlined_call_operand.vmem [shape: f32[2,768], index: 1, kind: input, shape index: {}]   ;;  %s335_s2 = inlined_call_operand.vmem [shape: f32[2,2], index: 2, kind: output, shape index: {}]  }
   0x1   :  { %v11_v1 = vld [vmem:[%s333_s0] sm:$0xff]  ;;  %v19_v3 = vunpack.c.l.s4 %v302_v2  ;;  %v298_v14 = vld.sshfl [vmem:[%s333_s0 + $0x8] sm:$0x33 pattern:$0x76325410] }
   0x2   :  { %v13_v4 = vld [vmem:[%s334_s1] sm:$0xff]  ;;  %v22_v5 = vshrl.u32 %v21_v0, 7  ;;  %v50_v7 = vcombine.high %v11_v1, %v11_v1  ;;  %v297_v19 = vld.sshfl [vmem:[%s334_s1 + $0x8] sm:$0x33 pattern:$0x76325410]  ;;  %v74_v20 = vcombine.high %v298_v14, %v298_v14 }
   0x3   :  { %v20_v6 = vunpack.c.0.s8 %v19_v3  ;;  %v17_v8 = vcombine.high %v13_v4, %v13_v4  ;;  %v41_v21 = vcombine.high %v297_v19, %v297_v19 }
   0x5   :  { %v23_v9 = vsub.s32 %v20_v6, %v22_v5 }
   0x7   :  { %v57_v10 = vrot.slane %v11_v1, %v23_v9  ;;  %v64_v11 = vrot.slane %v50_v7, %v23_v9  ;;  %v24_v12 = vrot.slane %v13_v4, %v23_v9  ;;  %v31_v13 = vrot.slane %v17_v8, %v23_v9 }
   0x9   :  { %v65_v15 = vcombine.high %v57_v10, %v57_v10  ;;  %v66_v16 = vcombine.high %v64_v11, %v64_v11  ;;  %v32_v17 = vcombine.high %v24_v12, %v24_v12  ;;  %v33_v18 = vcombine.high %v31_v13, %v31_v13 }
   0xb   :  { %111 = vmatprep.subr.mxu0 %v65_v15  ;;  %181 = vmatprep.subr.mxu1 %v66_v16 }
   0xc   :  { %112 = vmatpush1.xpose.msra.mxu0 %v57_v10  ;;  %182 = vmatpush1.xpose.msra.mxu1 %v64_v11 }
   0xd   :  { %145 = vmatprep.mubr.f32.mxu0 %v32_v17  ;;  %215 = vmatprep.mubr.f32.mxu1 %v33_v18 }
   0xe   :  { %251 = vmatprep.subr.mxu0 %v74_v20 }
   0xf   :  { %146 = vmatmul.mubr.f32.vlgmr.msra.gmra.mxu0 %v24_v12  ;;  %216 = vmatmul.mubr.f32.vlgmr.msra.gmra.mxu1 %v31_v13 }
  0x10   :  { %252 = vmatpush1.xpose.msra.mxu0 %v298_v14  ;;  %285 = vmatprep.mubr.f32.mxu0 %v41_v21 }
  0x13   :  { %286 = vmatmul.mubr.f32.vlgmr.msra.gmra.mxu0 %v297_v19 }
  0xcf   :  { %v147_v22 = vpop.f32.mrf.mxu0  ;;  %v217_v23 = vpop.f32.mrf.mxu1 }
  0xd0   :  { %v218_v26 = vadd.f32 %v217_v23, %v147_v22 }
  0xd1   :  { %v149_v24 = vpop.f32.mrf.mxu0  ;;  %v219_v25 = vpop.f32.mrf.mxu1 }
  0xd3   :  { %v287_v27 = vpop.f32.mrf.mxu0 }
  0xd4   :  { %v288_v28 = vadd.f32 %v287_v27, %v218_v26 }
  0xd5   :  { %v289_v29 = vpop.f32.mrf.mxu0 }
  0xd6   :  { %292 = vst.msk [vmem:[%s335_s2] sm:$0x3] %vm291_vm0, %v288_v28 }

</bundles_post_ra>
